<compile_context>
chip_gen: v7x
topology: tpu7x:2x2x1
jax: 0.10.0
libtpu: 0.0.40
codegen_flags: <defaults>
</compile_context>

<pallas_src>
import functools

import jax
import jax.numpy as jnp
from jax.experimental import pallas as pl
from jax.experimental.pallas import tpu as pltpu

_LANE = 128


def _round_up(x, n):
    return ((x + n - 1) // n) * n


def _num_tensorcores():
    """Trace-time TensorCore count (2 on v7x, 1 on v5e/v6e). Robust fallbacks."""
    try:
        info = pltpu.get_tpu_info()
        for attr in ("num_cores", "core_count", "num_tensorcores", "tensorcore_count"):
            v = getattr(info, attr, None)
            if isinstance(v, int) and v > 0:
                return max(1, min(int(v), 2))
    except Exception:
        pass
    try:
        kind = jax.devices()[0].device_kind.lower()
        if "v7" in kind:
            return 2
    except Exception:
        pass
    return 1


def _choose_tile_m(m, tile_m_cap, num_cores):
    """Row tile: multiple of 128, split evenly across TensorCores if >1."""
    m128 = _round_up(max(m, 1), _LANE)
    if num_cores > 1 and m128 > _LANE:
        tile = _round_up(pl.cdiv(m128, num_cores), _LANE)
    else:
        tile = m128
    tile = min(tile, max(_LANE, _round_up(tile_m_cap, _LANE)))
    return max(tile, _LANE)


def _mlp_kernel(num_layers, compute_dtype, x_ref, *refs):
    """refs = (w0, b0, w1, b1, ..., w_{L-1}, b_{L-1}, out_ref).

    Weights arrive pre-cast to `compute_dtype` (bf16); biases in f32.
    Matmuls accumulate in f32 (preferred_element_type); bias add + ReLU in f32
    (v5e VPU/EUP have no bf16 path, and the epilogue rides free under the MXU).
    """
    out_ref = refs[-1]
    params = refs[:-1]

    h = x_ref[...]
    for i in range(num_layers):
        w = params[2 * i][...]
        b = params[2 * i + 1][...]
        h = jnp.dot(h.astype(compute_dtype), w,
                    preferred_element_type=jnp.float32) + b
        if i < num_layers - 1:
            h = jnp.maximum(h, 0.0)  # F.relu on all but the last layer
    out_ref[...] = h.astype(out_ref.dtype)


def _prepare_params(weights, biases, compute_dtype):
    """One-time padding/casting of the Linear parameters (hoisted out of the call).

    Every feature dim is zero-padded to a multiple of 128 so all loads, vreg
    ops and stores are lane-dense; zero padding is mathematically exact
    (padded x features are 0, padded W rows/cols and bias entries are 0).
    """
    num_layers = len(weights)
    dims = [weights[0].shape[0]] + [w.shape[-1] for w in weights]
    pdims = [_round_up(d, _LANE) for d in dims]

    wps, bps = [], []
    for i, (w, b) in enumerate(zip(weights, biases)):
        wp = (jnp.zeros((pdims[i], pdims[i + 1]), compute_dtype)
              .at[: w.shape[0], : w.shape[1]].set(w.astype(compute_dtype)))
        bp = (jnp.zeros((1, pdims[i + 1]), jnp.float32)
              .at[0, : b.shape[0]].set(b.astype(jnp.float32)))
        wps.append(wp)
        bps.append(bp)
    return tuple(wps), tuple(bps), dims[0], dims[-1], num_layers


def _mlp_pallas(x, wps, bps, *, in_dim, out_dim, num_layers, compute_dtype,
                tile_m_cap, num_cores):
    lead_shape = x.shape[:-1]
    assert x.shape[-1] == in_dim

    pdims = [wps[0].shape[0]] + [w.shape[1] for w in wps]

    x2d = x.reshape(-1, in_dim)
    m = x2d.shape[0]

    tile_m = _choose_tile_m(m, tile_m_cap, num_cores)
    grid_m = pl.cdiv(m, tile_m)
    m_pad = grid_m * tile_m

    # Pad rows to the tile and features to the 128-lane width (fuses under jit).
    if m_pad != m or pdims[0] != in_dim:
        xp = jnp.zeros((m_pad, pdims[0]), x.dtype).at[:m, :in_dim].set(x2d)
    else:
        xp = x2d

    # x / output tiled over rows; weights & biases use a constant index_map so
    # Pallas DMAs them once and keeps them VMEM-resident for the whole grid.
    in_specs = [pl.BlockSpec((tile_m, pdims[0]), lambda i: (i, 0))]
    for wp, bp in zip(wps, bps):
        in_specs.append(pl.BlockSpec(wp.shape, lambda i: (0, 0)))
        in_specs.append(pl.BlockSpec(bp.shape, lambda i: (0, 0)))
    out_spec = pl.BlockSpec((tile_m, pdims[-1]), lambda i: (i, 0))

    out_itemsize = jnp.dtype(x.dtype).itemsize
    param_bytes = (sum(w.size * w.dtype.itemsize for w in wps)
                   + sum(b.size * b.dtype.itemsize for b in bps))
    x_block_bytes = tile_m * pdims[0] * jnp.dtype(xp.dtype).itemsize
    out_block_bytes = tile_m * pdims[-1] * out_itemsize
    # Double-buffered tiled x/out + (possibly double-buffered) resident params
    # + headroom; clamp to v7x's 64 MiB physical per-TC VMEM.
    vmem_needed = 2 * (x_block_bytes + out_block_bytes) + 2 * param_bytes + (2 << 20)
    vmem_limit = int(min(64 * 1024 * 1024, max(vmem_needed, 4 * 1024 * 1024)))

    flops = 2 * m_pad * sum(pdims[i] * pdims[i + 1] for i in range(num_layers))
    bytes_accessed = int(xp.size * jnp.dtype(xp.dtype).itemsize
                         + param_bytes
                         + m_pad * pdims[-1] * out_itemsize)

    kernel = functools.partial(_mlp_kernel, num_layers, compute_dtype)

    y2d = pl.pallas_call(
        kernel,
        out_shape=jax.ShapeDtypeStruct((m_pad, pdims[-1]), x.dtype),
        grid_spec=pltpu.PrefetchScalarGridSpec(
            num_scalar_prefetch=0,
            grid=(grid_m,),
            in_specs=in_specs,
            out_specs=out_spec,
        ),
        compiler_params=pltpu.CompilerParams(
            dimension_semantics=("parallel",),
            vmem_limit_bytes=vmem_limit,
        ),
        cost_estimate=pl.CostEstimate(
            flops=flops, transcendentals=0, bytes_accessed=bytes_accessed
        ),
    )(xp, *[p for wb in zip(wps, bps) for p in wb])

    # Lane-dense padded output block; slice off padding (fuses under jit).
    return y2d[:m, :out_dim].reshape(*lead_shape, out_dim)


def make_mlp_forward(weights, biases, *, tile_m_cap=512,
                     compute_dtype=jnp.bfloat16):
    """Build a jitted forward fn.  Param padding/casting happens once here.

    weights[i]: (d_in_i, d_out_i) -- note: (in, out) layout, i.e. the transpose
    of torch.nn.Linear.weight.  biases[i]: (d_out_i,).
    """
    wps, bps, in_dim, out_dim, num_layers = _prepare_params(
        weights, biases, compute_dtype)
    num_cores = _num_tensorcores()

    @jax.jit
    def forward(x):
        return _mlp_pallas(
            x, wps, bps,
            in_dim=in_dim, out_dim=out_dim, num_layers=num_layers,
            compute_dtype=compute_dtype, tile_m_cap=tile_m_cap,
            num_cores=num_cores)

    return forward


def mlp_reference(x, weights, biases):
    """Pure-JAX reference mirroring the PyTorch forward exactly (f32)."""
    num_layers = len(weights)
    h = x.astype(jnp.float32)
    for i, (w, b) in enumerate(zip(weights, biases)):
        h = h @ w + b
        if i < num_layers - 1:
            h = jnp.maximum(h, 0.0)
    return h.astype(x.dtype)


if __name__ == "__main__":
    # DETR bbox-embed MLP: 3 layers, 4-dim box output.
    input_dim = 32
    hidden_dim = 32
    output_dim = 4
    num_layers = 3

    # x layout: [batch, num_queries, input_dim]  (Linear acts on the last dim).
    batch, seq = 2, 100

    key = jax.random.PRNGKey(0)
    k_x, *k_params = jax.random.split(key, 1 + 2 * num_layers)

    x = jax.random.normal(k_x, (batch, seq, input_dim), dtype=jnp.float32)

    dims = [input_dim] + [hidden_dim] * (num_layers - 1) + [output_dim]
    weights, biases = [], []
    for i in range(num_layers):
        d_in, d_out = dims[i], dims[i + 1]
        w = jax.random.normal(k_params[2 * i], (d_in, d_out), dtype=jnp.float32) * 0.1
        b = jax.random.normal(k_params[2 * i + 1], (d_out,), dtype=jnp.float32) * 0.1
        weights.append(w)
        biases.append(b)

    # Parameters are padded/cast exactly once here; per-call work is only the
    # (jit-fused) x pad, the Pallas kernel, and the (jit-fused) output slice.
    mlp_forward = make_mlp_forward(weights, biases)

    y = mlp_forward(x)
    y = jax.block_until_ready(y)

    y_ref = mlp_reference(x, weights, biases)
    assert y.shape == (batch, seq, output_dim)
    # bf16 MXU inputs with f32 accumulation (activations re-quantized per layer)
    # -> slightly looser tolerance vs. the pure-f32 reference.
    assert jnp.allclose(y, y_ref, atol=3e-2, rtol=3e-2), "mismatch vs reference"

    print("KERNEL_OK")
</pallas_src>

<mosaic_0001>
module attributes {stable_mosaic.version = 11 : i64} {
  func.func @_mlp_kernel(%arg0: i32, %arg1: memref<256x128xf32, #tpu.memory_space<vmem>>, %arg2: memref<128x128xbf16, #tpu.memory_space<vmem>>, %arg3: memref<1x128xf32, #tpu.memory_space<vmem>>, %arg4: memref<128x128xbf16, #tpu.memory_space<vmem>>, %arg5: memref<1x128xf32, #tpu.memory_space<vmem>>, %arg6: memref<128x128xbf16, #tpu.memory_space<vmem>>, %arg7: memref<1x128xf32, #tpu.memory_space<vmem>>, %arg8: memref<256x128xf32, #tpu.memory_space<vmem>>) attributes {dimension_semantics = [#tpu.dimension_semantics<parallel>], iteration_bounds = array<i64: 1>, scalar_prefetch = 0 : i64, scratch_operands = 0 : i64, tpu.core_type = #tpu.core_type<tc>, window_params = [{transform_indices = @transform_0, window_bounds = array<i64: 256, 128>}, {pipeline_mode = #tpu.pipeline_mode<synchronous>, transform_indices = @transform_1, window_bounds = array<i64: 128, 128>}, {pipeline_mode = #tpu.pipeline_mode<synchronous>, transform_indices = @transform_2, window_bounds = array<i64: 1, 128>}, {pipeline_mode = #tpu.pipeline_mode<synchronous>, transform_indices = @transform_3, window_bounds = array<i64: 128, 128>}, {pipeline_mode = #tpu.pipeline_mode<synchronous>, transform_indices = @transform_4, window_bounds = array<i64: 1, 128>}, {pipeline_mode = #tpu.pipeline_mode<synchronous>, transform_indices = @transform_5, window_bounds = array<i64: 128, 128>}, {pipeline_mode = #tpu.pipeline_mode<synchronous>, transform_indices = @transform_6, window_bounds = array<i64: 1, 128>}, {transform_indices = @transform_7, window_bounds = array<i64: 256, 128>}]} {
    %c0 = arith.constant 0 : index
    %c0_0 = arith.constant 0 : index
    %0 = vector.load %arg1[%c0, %c0_0] : memref<256x128xf32, #tpu.memory_space<vmem>>, vector<256x128xf32>
    %c0_1 = arith.constant 0 : index
    %c0_2 = arith.constant 0 : index
    %1 = vector.load %arg2[%c0_1, %c0_2] : memref<128x128xbf16, #tpu.memory_space<vmem>>, vector<128x128xbf16>
    %c0_3 = arith.constant 0 : index
    %c0_4 = arith.constant 0 : index
    %2 = vector.load %arg3[%c0_3, %c0_4] : memref<1x128xf32, #tpu.memory_space<vmem>>, vector<1x128xf32>
    %3 = arith.truncf %0 : vector<256x128xf32> to vector<256x128xbf16>
    %cst = arith.constant dense<0.000000e+00> : vector<256x128xf32>
    %4 = tpu.matmul %3, %1, %cst {dimension_numbers = #tpu.dot_dimension_numbers<[1], [0], [0], [1], [0, 0, 1, 1], [], []>} : vector<256x128xbf16>, vector<128x128xbf16>, vector<256x128xf32> -> vector<256x128xf32>
    %5 = vector.broadcast %2 : vector<1x128xf32> to vector<256x128xf32>
    %6 = arith.addf %4, %5 : vector<256x128xf32>
    %cst_5 = arith.constant 0.000000e+00 : f32
    %7 = vector.broadcast %cst_5 : f32 to vector<256x128xf32>
    %8 = arith.maximumf %6, %7 : vector<256x128xf32>
    %c0_6 = arith.constant 0 : index
    %c0_7 = arith.constant 0 : index
    %9 = vector.load %arg4[%c0_6, %c0_7] : memref<128x128xbf16, #tpu.memory_space<vmem>>, vector<128x128xbf16>
    %c0_8 = arith.constant 0 : index
    %c0_9 = arith.constant 0 : index
    %10 = vector.load %arg5[%c0_8, %c0_9] : memref<1x128xf32, #tpu.memory_space<vmem>>, vector<1x128xf32>
    %11 = arith.truncf %8 : vector<256x128xf32> to vector<256x128xbf16>
    %cst_10 = arith.constant dense<0.000000e+00> : vector<256x128xf32>
    %12 = tpu.matmul %11, %9, %cst_10 {dimension_numbers = #tpu.dot_dimension_numbers<[1], [0], [0], [1], [0, 0, 1, 1], [], []>} : vector<256x128xbf16>, vector<128x128xbf16>, vector<256x128xf32> -> vector<256x128xf32>
    %13 = vector.broadcast %10 : vector<1x128xf32> to vector<256x128xf32>
    %14 = arith.addf %12, %13 : vector<256x128xf32>
    %cst_11 = arith.constant 0.000000e+00 : f32
    %15 = vector.broadcast %cst_11 : f32 to vector<256x128xf32>
    %16 = arith.maximumf %14, %15 : vector<256x128xf32>
    %c0_12 = arith.constant 0 : index
    %c0_13 = arith.constant 0 : index
    %17 = vector.load %arg6[%c0_12, %c0_13] : memref<128x128xbf16, #tpu.memory_space<vmem>>, vector<128x128xbf16>
    %c0_14 = arith.constant 0 : index
    %c0_15 = arith.constant 0 : index
    %18 = vector.load %arg7[%c0_14, %c0_15] : memref<1x128xf32, #tpu.memory_space<vmem>>, vector<1x128xf32>
    %19 = arith.truncf %16 : vector<256x128xf32> to vector<256x128xbf16>
    %cst_16 = arith.constant dense<0.000000e+00> : vector<256x128xf32>
    %20 = tpu.matmul %19, %17, %cst_16 {dimension_numbers = #tpu.dot_dimension_numbers<[1], [0], [0], [1], [0, 0, 1, 1], [], []>} : vector<256x128xbf16>, vector<128x128xbf16>, vector<256x128xf32> -> vector<256x128xf32>
    %21 = vector.broadcast %18 : vector<1x128xf32> to vector<256x128xf32>
    %22 = arith.addf %20, %21 : vector<256x128xf32>
    %c0_17 = arith.constant 0 : index
    %c0_18 = arith.constant 0 : index
    %23 = vector.load %arg8[%c0_17, %c0_18] : memref<256x128xf32, #tpu.memory_space<vmem>>, vector<256x128xf32>
    tpu.vector_store %arg8[%c0_17, %c0_18], %22 {strides = array<i32>} : memref<256x128xf32, #tpu.memory_space<vmem>>, vector<256x128xf32>,
    return
  }
  func.func @transform_0(%arg0: i32) -> (i32, i32) {
    %c0_i32 = arith.constant 0 : i32
    %c0_i32_0 = arith.constant 0 : i32
    return %arg0, %c0_i32 : i32, i32
  }
  func.func @transform_1(%arg0: i32) -> (i32, i32) {
    %c0_i32 = arith.constant 0 : i32
    %c0_i32_0 = arith.constant 0 : i32
    %c0_i32_1 = arith.constant 0 : i32
    return %c0_i32, %c0_i32_0 : i32, i32
  }
  func.func @transform_2(%arg0: i32) -> (i32, i32) {
    %c0_i32 = arith.constant 0 : i32
    %c0_i32_0 = arith.constant 0 : i32
    %c0_i32_1 = arith.constant 0 : i32
    return %c0_i32, %c0_i32_0 : i32, i32
  }
  func.func @transform_3(%arg0: i32) -> (i32, i32) {
    %c0_i32 = arith.constant 0 : i32
    %c0_i32_0 = arith.constant 0 : i32
    %c0_i32_1 = arith.constant 0 : i32
    return %c0_i32, %c0_i32_0 : i32, i32
  }
  func.func @transform_4(%arg0: i32) -> (i32, i32) {
    %c0_i32 = arith.constant 0 : i32
    %c0_i32_0 = arith.constant 0 : i32
    %c0_i32_1 = arith.constant 0 : i32
    return %c0_i32, %c0_i32_0 : i32, i32
  }
  func.func @transform_5(%arg0: i32) -> (i32, i32) {
    %c0_i32 = arith.constant 0 : i32
    %c0_i32_0 = arith.constant 0 : i32
    %c0_i32_1 = arith.constant 0 : i32
    return %c0_i32, %c0_i32_0 : i32, i32
  }
  func.func @transform_6(%arg0: i32) -> (i32, i32) {
    %c0_i32 = arith.constant 0 : i32
    %c0_i32_0 = arith.constant 0 : i32
    %c0_i32_1 = arith.constant 0 : i32
    return %c0_i32, %c0_i32_0 : i32, i32
  }
  func.func @transform_7(%arg0: i32) -> (i32, i32) {
    %c0_i32 = arith.constant 0 : i32
    %c0_i32_0 = arith.constant 0 : i32
    return %arg0, %c0_i32 : i32, i32
  }
}

</mosaic_0001>

<bundles_post_ra>
// kernel: forward.1
= control target key start
LH: loop header
LB: loop body
LE: loop exit
PB: predicated region body
PF: predicated region fallthrough
CT: control target
= control target key end

     0   :  { %s1610_s1 = inlined_call_operand.vmem [shape: bf16[128,128], index: 1, kind: input, shape index: {}]   ;;  %s1611_s0 = inlined_call_operand.vmem [shape: f32[256,128], index: 0, kind: input, shape index: {}]   ;;  %s1612_s3 = inlined_call_operand.vmem [shape: bf16[128,128], index: 3, kind: input, shape index: {}]   ;;  %s1613_s5 = inlined_call_operand.vmem [shape: bf16[128,128], index: 5, kind: input, shape index: {}]   ;;  %s1614_s2 = inlined_call_operand.vmem [shape: f32[1,128], index: 2, kind: input, shape index: {}]   ;;  %s1615_s4 = inlined_call_operand.vmem [shape: f32[1,128], index: 4, kind: input, shape index: {}]   ;;  %s1616_s6 = inlined_call_operand.vmem [shape: f32[1,128], index: 6, kind: input, shape index: {}]   ;;  %s1617_s7 = inlined_call_operand.vmem [shape: f32[256,128], index: 7, kind: output, shape index: {}]  }
   0x1   :  { %v1162_v0 = vld [vmem:[%s1610_s1] sm:$0xff]   ;;  %v1163_v1 = vld [vmem:[%s1610_s1 + $0x8] sm:$0xff]   ;;  %v1164_v2 = vld [vmem:[%s1610_s1 + $0x10] sm:$0xff]  }
   0x2   :  { %1002 = vmatprep.subr.bf16.mxu0 %v1162_v0  ;;  %1146 = vmatprep.subr.bf16.mxu1 %v1162_v0  ;;  %v1165_v3 = vld [vmem:[%s1610_s1 + $0x18] sm:$0xff]   ;;  %v27_v4 = vld [vmem:[%s1611_s0] sm:$0xff]  ;;  %v28_v5 = vld [vmem:[%s1611_s0 + $0x8] sm:$0xff] }
   0x3   :  { %1003 = vmatpush3.bf16.msra.mxu0 %v1162_v0  ;;  %1154 = vmatpush3.bf16.msra.mxu1 %v1162_v0  ;;  %v76_v6 = vpack.c.bf16 %v28_v5, %v27_v4  ;;  %v1166_v7 = vld [vmem:[%s1610_s1 + $0x20] sm:$0xff]   ;;  %v44_v9 = vld [vmem:[%s1611_s0 + $0x88] sm:$0xff]  ;;  %v1168_v12 = vld [vmem:[%s1610_s1 + $0x30] sm:$0xff]  }
   0x4   :  { %1004 = vmatprep.subr.bf16.mxu0 %v1163_v1  ;;  %1147 = vmatprep.subr.bf16.mxu1 %v1163_v1  ;;  %v43_v8 = vld [vmem:[%s1611_s0 + $0x80] sm:$0xff]  ;;  %v1167_v11 = vld [vmem:[%s1610_s1 + $0x28] sm:$0xff]   ;;  %v1169_v13 = vld [vmem:[%s1610_s1 + $0x38] sm:$0xff]  }
   0x5   :  { %1018 = vmatprep.mubr.bf16.mxu0 %v76_v6  ;;  %v84_v10 = vpack.c.bf16 %v44_v9, %v43_v8  ;;  %v29_v14 = vld [vmem:[%s1611_s0 + $0x10] sm:$0xff]  ;;  %v30_v15 = vld [vmem:[%s1611_s0 + $0x18] sm:$0xff]  ;;  %v31_v16 = vld [vmem:[%s1611_s0 + $0x20] sm:$0xff] }
   0x6   :  { %v32_v17 = vld [vmem:[%s1611_s0 + $0x28] sm:$0xff]  ;;  %v45_v18 = vld [vmem:[%s1611_s0 + $0x90] sm:$0xff]  ;;  %v46_v19 = vld [vmem:[%s1611_s0 + $0x98] sm:$0xff]  ;;  %v77_v23 = vpack.c.bf16 %v30_v15, %v29_v14 }
   0x7   :  { %1005 = vmatpush3.bf16.msra.mxu0 %v1163_v1  ;;  %1155 = vmatpush3.bf16.msra.mxu1 %v1163_v1  ;;  %v47_v20 = vld [vmem:[%s1611_s0 + $0xa0] sm:$0xff]  ;;  %v48_v21 = vld [vmem:[%s1611_s0 + $0xa8] sm:$0xff]  ;;  %v78_v24 = vpack.c.bf16 %v32_v17, %v31_v16  ;;  %v85_v25 = vpack.c.bf16 %v46_v19, %v45_v18  ;;  %v33_v28 = vld [vmem:[%s1611_s0 + $0x30] sm:$0xff] }
   0x8   :  { %1006 = vmatprep.subr.bf16.mxu0 %v1164_v2  ;;  %1148 = vmatprep.subr.bf16.mxu1 %v1164_v2  ;;  %v1170_v22 = vld [vmem:[%s1612_s3] sm:$0xff]   ;;  %v86_v26 = vpack.c.bf16 %v48_v21, %v47_v20  ;;  %v1171_v27 = vld [vmem:[%s1612_s3 + $0x8] sm:$0xff]   ;;  %v34_v29 = vld [vmem:[%s1611_s0 + $0x38] sm:$0xff] }
   0x9   :  { %1034 = vmatprep.mubr.bf16.mxu1 %v84_v10  ;;  %v35_v30 = vld [vmem:[%s1611_s0 + $0x40] sm:$0xff]  ;;  %v36_v31 = vld [vmem:[%s1611_s0 + $0x48] sm:$0xff]  ;;  %v49_v32 = vld [vmem:[%s1611_s0 + $0xb0] sm:$0xff]  ;;  %v79_v37 = vpack.c.bf16 %v34_v29, %v33_v28 }
   0xa   :  { %v50_v33 = vld [vmem:[%s1611_s0 + $0xb8] sm:$0xff]  ;;  %v51_v34 = vld [vmem:[%s1611_s0 + $0xc0] sm:$0xff]  ;;  %v52_v35 = vld [vmem:[%s1611_s0 + $0xc8] sm:$0xff]  ;;  %v80_v38 = vpack.c.bf16 %v36_v31, %v35_v30 }
   0xb   :  { %1007 = vmatpush3.bf16.msra.mxu0 %v1164_v2  ;;  %1156 = vmatpush3.bf16.msra.mxu1 %v1164_v2  ;;  %v1172_v36 = vld [vmem:[%s1612_s3 + $0x10] sm:$0xff]   ;;  %v87_v39 = vpack.c.bf16 %v50_v33, %v49_v32  ;;  %v88_v40 = vpack.c.bf16 %v52_v35, %v51_v34  ;;  %v1173_v41 = vld [vmem:[%s1612_s3 + $0x18] sm:$0xff]   ;;  %v39_v44 = vld [vmem:[%s1611_s0 + $0x60] sm:$0xff] }
   0xc   :  { %1008 = vmatprep.subr.bf16.mxu0 %v1165_v3  ;;  %1149 = vmatprep.subr.bf16.mxu1 %v1165_v3  ;;  %v37_v42 = vld [vmem:[%s1611_s0 + $0x50] sm:$0xff]  ;;  %v38_v43 = vld [vmem:[%s1611_s0 + $0x58] sm:$0xff]  ;;  %v40_v45 = vld [vmem:[%s1611_s0 + $0x68] sm:$0xff] }
   0xd   :  { %v53_v46 = vld [vmem:[%s1611_s0 + $0xd0] sm:$0xff]  ;;  %v54_v47 = vld [vmem:[%s1611_s0 + $0xd8] sm:$0xff]  ;;  %v55_v48 = vld [vmem:[%s1611_s0 + $0xe0] sm:$0xff]  ;;  %v81_v51 = vpack.c.bf16 %v38_v43, %v37_v42  ;;  %v82_v52 = vpack.c.bf16 %v40_v45, %v39_v44 }
   0xe   :  { %v56_v49 = vld [vmem:[%s1611_s0 + $0xe8] sm:$0xff]  ;;  %v1174_v50 = vld [vmem:[%s1612_s3 + $0x20] sm:$0xff]   ;;  %v89_v53 = vpack.c.bf16 %v54_v47, %v53_v46  ;;  %v41_v56 = vld [vmem:[%s1611_s0 + $0x70] sm:$0xff] }
   0xf   :  { %1009 = vmatpush3.bf16.msra.mxu0 %v1165_v3  ;;  %1157 = vmatpush3.bf16.msra.mxu1 %v1165_v3  ;;  %v90_v54 = vpack.c.bf16 %v56_v49, %v55_v48  ;;  %v1175_v55 = vld [vmem:[%s1612_s3 + $0x28] sm:$0xff]   ;;  %v42_v57 = vld [vmem:[%s1611_s0 + $0x78] sm:$0xff]  ;;  %v57_v58 = vld [vmem:[%s1611_s0 + $0xf0] sm:$0xff] }
  0x10   :  { %1010 = vmatprep.subr.bf16.mxu0 %v1166_v7  ;;  %1150 = vmatprep.subr.bf16.mxu1 %v1166_v7  ;;  %v58_v59 = vld [vmem:[%s1611_s0 + $0xf8] sm:$0xff]  ;;  %v83_v60 = vpack.c.bf16 %v42_v57, %v41_v56  ;;  %v1176_v62 = vld [vmem:[%s1612_s3 + $0x30] sm:$0xff]   ;;  %v1178_v0 = vld [vmem:[%s1613_s5] sm:$0xff]  }
  0x11   :  { %v91_v61 = vpack.c.bf16 %v58_v59, %v57_v58  ;;  %v1177_v63 = vld [vmem:[%s1612_s3 + $0x38] sm:$0xff]   ;;  %v1179_v1 = vld [vmem:[%s1613_s5 + $0x8] sm:$0xff]   ;;  %v1180_v2 = vld [vmem:[%s1613_s5 + $0x10] sm:$0xff]  }
  0x12   :  { %v1181_v3 = vld [vmem:[%s1613_s5 + $0x18] sm:$0xff]   ;;  %v1182_v4 = vld [vmem:[%s1613_s5 + $0x20] sm:$0xff]   ;;  %v1183_v5 = vld [vmem:[%s1613_s5 + $0x28] sm:$0xff]  }
  0x13   :  { %1011 = vmatpush3.bf16.msra.mxu0 %v1166_v7  ;;  %1158 = vmatpush3.bf16.msra.mxu1 %v1166_v7  ;;  %v1391_v6 = vld [vmem:[%s1614_s2] ss:$0 sm:$0xff] }
  0x14   :  { %1012 = vmatprep.subr.bf16.mxu0 %v1167_v11  ;;  %1151 = vmatprep.subr.bf16.mxu1 %v1167_v11 }
  0x17   :  { %1013 = vmatpush3.bf16.msra.mxu0 %v1167_v11  ;;  %1159 = vmatpush3.bf16.msra.mxu1 %v1167_v11 }
  0x18   :  { %1014 = vmatprep.subr.bf16.mxu0 %v1168_v12  ;;  %1152 = vmatprep.subr.bf16.mxu1 %v1168_v12 }
  0x1b   :  { %1015 = vmatpush3.bf16.msra.mxu0 %v1168_v12  ;;  %1160 = vmatpush3.bf16.msra.mxu1 %v1168_v12 }
  0x1c   :  { %1016 = vmatprep.subr.bf16.mxu0 %v1169_v13  ;;  %1153 = vmatprep.subr.bf16.mxu1 %v1169_v13 }
  0x1f   :  { %1017 = vmatpush3.bf16.msra.mxu0 %v1169_v13  ;;  %1161 = vmatpush3.bf16.msra.mxu1 %v1169_v13 }
  0x20   :  { %1050 = vmatprep.subr.bf16.mxu1 %v1170_v22  ;;  %1098 = vmatprep.subr.bf16.mxu0 %v1178_v0 }
  0x22   :  { %1019 = vmatmul.mubr.bf16.vlgmr.msra.gmra.mrb[0].mxu0 %v77_v23  ;;  %1035 = vmatmul.mubr.bf16.vlgmr.msra.gmra.mrb[0].mxu1 %v85_v25 }
  0x23   :  { %1022 = vmatprep.mubr.bf16.mxu0 %v78_v24  ;;  %1038 = vmatprep.mubr.bf16.mxu1 %v86_v26 }
  0x24   :  { %1051 = vmatpush3.bf16.msra.mxu1 %v1170_v22  ;;  %1099 = vmatpush3.bf16.msra.mxu0 %v1178_v0 }
  0x25   :  { %1052 = vmatprep.subr.bf16.mxu1 %v1171_v27  ;;  %1100 = vmatprep.subr.bf16.mxu0 %v1179_v1 }
  0x28   :  { %1053 = vmatpush3.bf16.msra.mxu1 %v1171_v27  ;;  %1101 = vmatpush3.bf16.msra.mxu0 %v1179_v1 }
  0x29   :  { %1054 = vmatprep.subr.bf16.mxu1 %v1172_v36  ;;  %1102 = vmatprep.subr.bf16.mxu0 %v1180_v2 }
  0x2a   :  { %1023 = vmatmul.mubr.bf16.gmra.mrb[4].mxu0 %v79_v37  ;;  %1039 = vmatmul.mubr.bf16.gmra.mrb[4].mxu1 %v87_v39 }
  0x2b   :  { %1026 = vmatprep.mubr.bf16.mxu0 %v80_v38  ;;  %1042 = vmatprep.mubr.bf16.mxu1 %v88_v40 }
  0x2c   :  { %1055 = vmatpush3.bf16.msra.mxu1 %v1172_v36  ;;  %1103 = vmatpush3.bf16.msra.mxu0 %v1180_v2 }
  0x2d   :  { %1056 = vmatprep.subr.bf16.mxu1 %v1173_v41  ;;  %1104 = vmatprep.subr.bf16.mxu0 %v1181_v3 }
  0x30   :  { %1057 = vmatpush3.bf16.msra.mxu1 %v1173_v41  ;;  %1105 = vmatpush3.bf16.msra.mxu0 %v1181_v3 }
  0x31   :  { %1058 = vmatprep.subr.bf16.mxu1 %v1174_v50  ;;  %1106 = vmatprep.subr.bf16.mxu0 %v1182_v4 }
  0x32   :  { %1027 = vmatmul.mubr.bf16.gmra.mrb[8].mxu0 %v81_v51  ;;  %1043 = vmatmul.mubr.bf16.gmra.mrb[8].mxu1 %v89_v53 }
  0x33   :  { %1030 = vmatprep.mubr.bf16.mxu0 %v82_v52  ;;  %1046 = vmatprep.mubr.bf16.mxu1 %v90_v54 }
  0x34   :  { %1059 = vmatpush3.bf16.msra.mxu1 %v1174_v50  ;;  %1107 = vmatpush3.bf16.msra.mxu0 %v1182_v4 }
  0x35   :  { %1060 = vmatprep.subr.bf16.mxu1 %v1175_v55  ;;  %1108 = vmatprep.subr.bf16.mxu0 %v1183_v5 }
  0x38   :  { %1061 = vmatpush3.bf16.msra.mxu1 %v1175_v55  ;;  %1109 = vmatpush3.bf16.msra.mxu0 %v1183_v5 }
  0x39   :  { %1062 = vmatprep.subr.bf16.mxu1 %v1176_v62 }
  0x3a   :  { %1031 = vmatmul.mubr.bf16.gmra.mrb[12].mxu0 %v83_v60  ;;  %1047 = vmatmul.mubr.bf16.gmra.mrb[12].mxu1 %v91_v61 }
  0x3c   :  { %1063 = vmatpush3.bf16.msra.mxu1 %v1176_v62 }
  0x3d   :  { %1064 = vmatprep.subr.bf16.mxu1 %v1177_v63 }
  0x40   :  { %1065 = vmatpush3.bf16.msra.mxu1 %v1177_v63 }
  0xf5   :  { %v1020_v7 = vpop.f32.mrb[0].mxu0  ;;  %v1036_v10 = vpop.f32.mrb[0].mxu1 }
  0xf6   :  { %v189_v8 = vadd.f32 %v1020_v7, %v1391_v6  ;;  %v180_v9 = vpop.f32.mrb[1].mxu0  ;;  %v253_v13 = vadd.f32 %v1036_v10, %v1391_v6  ;;  %v244_v14 = vpop.f32.mrb[1].mxu1 }
  0xf7   :  { %v181_v11 = vadd.f32 %v1391_v6, %v180_v9  ;;  %v1021_v12 = vpop.f32.mrb[2].mxu0  ;;  %v245_v17 = vadd.f32 %v1391_v6, %v244_v14  ;;  %v1037_v18 = vpop.f32.mrb[2].mxu1 }
  0xf8   :  { %v192_v15 = vadd.f32 %v1021_v12, %v1391_v6  ;;  %v183_v16 = vpop.f32.mrb[3].mxu0  ;;  %v325_v20 = vmax.f32 %v253_v13, 0.0  ;;  %v256_v21 = vadd.f32 %v1037_v18, %v1391_v6  ;;  %v247_v22 = vpop.f32.mrb[3].mxu1  ;;  %v309_v23 = vmax.f32 %v189_v8, 0.0 }
  0xf9   :  { %v184_v19 = vadd.f32 %v1391_v6, %v183_v16  ;;  %v323_v25 = vmax.f32 %v245_v17, 0.0  ;;  %v248_v26 = vadd.f32 %v1391_v6, %v247_v22  ;;  %v307_v27 = vmax.f32 %v181_v11, 0.0 }
  0xfa   :  { %v310_v24 = vmax.f32 %v192_v15, 0.0  ;;  %v326_v29 = vmax.f32 %v256_v21, 0.0 }
  0xfb   :  { %v308_v28 = vmax.f32 %v184_v19, 0.0  ;;  %v324_v31 = vmax.f32 %v248_v26, 0.0 }
  0xfc   :  { %v357_v30 = vpack.c.bf16 %v310_v24, %v309_v23  ;;  %v1401_v34 = vpack.c.bf16 %v326_v29, %v325_v20 }
  0xfd   :  { %v356_v32 = vpack.c.bf16 %v308_v28, %v307_v27  ;;  %v1024_v33 = vpop.f32.mrb[4].mxu0  ;;  %v1404_v37 = vpack.c.bf16 %v324_v31, %v323_v25  ;;  %v1040_v38 = vpop.f32.mrb[4].mxu1 }
  0xfe   :  { %v205_v35 = vadd.f32 %v1024_v33, %v1391_v6  ;;  %v196_v36 = vpop.f32.mrb[5].mxu0  ;;  %v269_v41 = vadd.f32 %v1040_v38, %v1391_v6  ;;  %v260_v42 = vpop.f32.mrb[5].mxu1 }
  0xff   :  { %v197_v39 = vadd.f32 %v1391_v6, %v196_v36  ;;  %v1025_v40 = vpop.f32.mrb[6].mxu0  ;;  %1066 = vmatprep.mubr.bf16.mxu1 %v356_v32  ;;  %v261_v45 = vadd.f32 %v1391_v6, %v260_v42  ;;  %v1041_v46 = vpop.f32.mrb[6].mxu1 }
 0x100   :  { %v208_v43 = vadd.f32 %v1025_v40, %v1391_v6  ;;  %v199_v44 = vpop.f32.mrb[7].mxu0  ;;  %1067 = vmatmul.mubr.bf16.vlgmr.msra.gmra.mrb[16].mxu1 %v357_v30  ;;  %v329_v48 = vmax.f32 %v269_v41, 0.0  ;;  %v272_v49 = vadd.f32 %v1041_v46, %v1391_v6  ;;  %v263_v50 = vpop.f32.mrb[7].mxu1  ;;  %v313_v51 = vmax.f32 %v205_v35, 0.0 }
 0x101   :  { %v200_v47 = vadd.f32 %v1391_v6, %v199_v44  ;;  %v327_v53 = vmax.f32 %v261_v45, 0.0  ;;  %v264_v54 = vadd.f32 %v1391_v6, %v263_v50  ;;  %v311_v55 = vmax.f32 %v197_v39, 0.0 }
 0x102   :  { %v314_v52 = vmax.f32 %v208_v43, 0.0  ;;  %v330_v57 = vmax.f32 %v272_v49, 0.0 }
 0x103   :  { %v312_v56 = vmax.f32 %v200_v47, 0.0  ;;  %v328_v59 = vmax.f32 %v264_v54, 0.0 }
 0x104   :  { %v359_v58 = vpack.c.bf16 %v314_v52, %v313_v51  ;;  %v1413_v62 = vpack.c.bf16 %v330_v57, %v329_v48 }
 0x105   :  { %v358_v60 = vpack.c.bf16 %v312_v56, %v311_v55  ;;  %v1028_v61 = vpop.f32.mrb[8].mxu0  ;;  %v366_v1 = vpack.c.bf16 %v328_v59, %v327_v53  ;;  %v1044_v2 = vpop.f32.mrb[8].mxu1 }
 0x106   :  { %v221_v63 = vadd.f32 %v1028_v61, %v1391_v6  ;;  %v212_v0 = vpop.f32.mrb[9].mxu0  ;;  %v285_v5 = vadd.f32 %v1044_v2, %v1391_v6  ;;  %v276_v7 = vpop.f32.mrb[9].mxu1 }
 0x107   :  { %v213_v3 = vadd.f32 %v1391_v6, %v212_v0  ;;  %v1029_v4 = vpop.f32.mrb[10].mxu0  ;;  %1070 = vmatprep.mubr.bf16.mxu1 %v358_v60  ;;  %v277_v10 = vadd.f32 %v1391_v6, %v276_v7  ;;  %v1045_v11 = vpop.f32.mrb[10].mxu1 }
 0x108   :  { %v224_v8 = vadd.f32 %v1029_v4, %v1391_v6  ;;  %v215_v9 = vpop.f32.mrb[11].mxu0  ;;  %1071 = vmatmul.mubr.bf16.gmra.mrb[20].mxu1 %v359_v58  ;;  %v333_v13 = vmax.f32 %v285_v5, 0.0  ;;  %v288_v14 = vadd.f32 %v1045_v11, %v1391_v6  ;;  %v279_v15 = vpop.f32.mrb[11].mxu1  ;;  %v317_v16 = vmax.f32 %v221_v63, 0.0  ;;  %v1185_v58 = vld [vmem:[%s1613_s5 + $0x38] sm:$0xff]  }
 0x109   :  { %v216_v12 = vadd.f32 %v1391_v6, %v215_v9  ;;  %v331_v18 = vmax.f32 %v277_v10, 0.0  ;;  %v280_v19 = vadd.f32 %v1391_v6, %v279_v15  ;;  %v315_v20 = vmax.f32 %v213_v3, 0.0 }
 0x10a   :  { %v318_v17 = vmax.f32 %v224_v8, 0.0  ;;  %v334_v22 = vmax.f32 %v288_v14, 0.0 }
 0x10b   :  { %v316_v21 = vmax.f32 %v216_v12, 0.0  ;;  %v332_v24 = vmax.f32 %v280_v19, 0.0 }
 0x10c   :  { %v361_v23 = vpack.c.bf16 %v318_v17, %v317_v16  ;;  %v369_v27 = vpack.c.bf16 %v334_v22, %v333_v13 }
 0x10d   :  { %v360_v25 = vpack.c.bf16 %v316_v21, %v315_v20  ;;  %v1032_v26 = vpop.f32.mrb[12].mxu0  ;;  %v368_v30 = vpack.c.bf16 %v332_v24, %v331_v18  ;;  %v1048_v31 = vpop.f32.mrb[12].mxu1 }
 0x10e   :  { %v237_v28 = vadd.f32 %v1032_v26, %v1391_v6  ;;  %v228_v29 = vpop.f32.mrb[13].mxu0  ;;  %v301_v35 = vadd.f32 %v1048_v31, %v1391_v6  ;;  %v292_v36 = vpop.f32.mrb[13].mxu1 }
 0x10f   :  { %v229_v32 = vadd.f32 %v1391_v6, %v228_v29  ;;  %v1033_v33 = vpop.f32.mrb[14].mxu0  ;;  %1074 = vmatprep.mubr.bf16.mxu1 %v360_v25  ;;  %v293_v40 = vadd.f32 %v1391_v6, %v292_v36  ;;  %v1049_v41 = vpop.f32.mrb[14].mxu1 }
 0x110   :  { %v240_v38 = vadd.f32 %v1033_v33, %v1391_v6  ;;  %v231_v39 = vpop.f32.mrb[15].mxu0  ;;  %1075 = vmatmul.mubr.bf16.gmra.mrb[24].mxu1 %v361_v23  ;;  %v337_v43 = vmax.f32 %v301_v35, 0.0  ;;  %v304_v44 = vadd.f32 %v1049_v41, %v1391_v6  ;;  %v295_v45 = vpop.f32.mrb[15].mxu1  ;;  %v321_v46 = vmax.f32 %v237_v28, 0.0 }
 0x111   :  { %v232_v42 = vadd.f32 %v1391_v6, %v231_v39  ;;  %v335_v48 = vmax.f32 %v293_v40, 0.0  ;;  %v296_v49 = vadd.f32 %v1391_v6, %v295_v45  ;;  %v319_v50 = vmax.f32 %v229_v32, 0.0  ;;  %v1184_v6 = vld [vmem:[%s1613_s5 + $0x30] sm:$0xff]  }
 0x112   :  { %v322_v47 = vmax.f32 %v240_v38, 0.0  ;;  %v338_v52 = vmax.f32 %v304_v44, 0.0  ;;  %1110 = vmatprep.subr.bf16.mxu0 %v1184_v6 }
 0x113   :  { %v320_v51 = vmax.f32 %v232_v42, 0.0  ;;  %v336_v54 = vmax.f32 %v296_v49, 0.0  ;;  %1111 = vmatpush3.bf16.msra.mxu0 %v1184_v6 }
 0x114   :  { %v363_v53 = vpack.c.bf16 %v322_v47, %v321_v46  ;;  %v371_v56 = vpack.c.bf16 %v338_v52, %v337_v43  ;;  %1112 = vmatprep.subr.bf16.mxu0 %v1185_v58 }
 0x115   :  { %v362_v55 = vpack.c.bf16 %v320_v51, %v319_v50  ;;  %v370_v57 = vpack.c.bf16 %v336_v54, %v335_v48 }
 0x117   :  { %1078 = vmatprep.mubr.bf16.mxu1 %v362_v55  ;;  %1113 = vmatpush3.bf16.msra.mxu0 %v1185_v58 }
 0x118   :  { %1079 = vmatmul.mubr.bf16.gmra.mrb[28].mxu1 %v363_v53 }
 0x119   :  { %1082 = vmatprep.mubr.bf16.mxu1 %v1404_v37 }
 0x120   :  { %1083 = vmatmul.mubr.bf16.gmra.mrb[32].mxu1 %v1401_v34  ;;  %v1443_v34 = vld [vmem:[%s1615_s4] ss:$0 sm:$0xff] }
 0x121   :  { %1086 = vmatprep.mubr.bf16.mxu1 %v366_v1 }
 0x128   :  { %1087 = vmatmul.mubr.bf16.gmra.mrb[36].mxu1 %v1413_v62 }
 0x129   :  { %1090 = vmatprep.mubr.bf16.mxu1 %v368_v30 }
 0x130   :  { %1091 = vmatmul.mubr.bf16.gmra.mrb[40].mxu1 %v369_v27 }
 0x131   :  { %1094 = vmatprep.mubr.bf16.mxu1 %v370_v57 }
 0x138   :  { %1095 = vmatmul.mubr.bf16.gmra.mrb[44].mxu1 %v371_v56 }
 0x1d3   :  { %v1068_v37 = vpop.f32.mrb[16].mxu1 }
 0x1d4   :  { %v469_v59 = vadd.f32 %v1068_v37, %v1443_v34  ;;  %v460_v60 = vpop.f32.mrb[17].mxu1 }
 0x1d5   :  { %v461_v61 = vadd.f32 %v1443_v34, %v460_v60  ;;  %v1069_v62 = vpop.f32.mrb[18].mxu1 }
 0x1d6   :  { %v472_v63 = vadd.f32 %v1069_v62, %v1443_v34  ;;  %v463_v0 = vpop.f32.mrb[19].mxu1  ;;  %v589_v2 = vmax.f32 %v469_v59, 0.0 }
 0x1d7   :  { %v464_v1 = vadd.f32 %v1443_v34, %v463_v0  ;;  %v587_v4 = vmax.f32 %v461_v61, 0.0 }
 0x1d8   :  { %v590_v3 = vmax.f32 %v472_v63, 0.0 }
 0x1d9   :  { %v588_v5 = vmax.f32 %v464_v1, 0.0 }
 0x1da   :  { %v637_v7 = vpack.c.bf16 %v590_v3, %v589_v2 }
 0x1db   :  { %v636_v8 = vpack.c.bf16 %v588_v5, %v587_v4  ;;  %v1072_v9 = vpop.f32.mrb[20].mxu1 }
 0x1dc   :  { %v485_v10 = vadd.f32 %v1072_v9, %v1443_v34  ;;  %v476_v11 = vpop.f32.mrb[21].mxu1 }
 0x1dd   :  { %v477_v12 = vadd.f32 %v1443_v34, %v476_v11  ;;  %v1073_v13 = vpop.f32.mrb[22].mxu1  ;;  %1114 = vmatprep.mubr.bf16.mxu0 %v636_v8 }
 0x1de   :  { %v488_v14 = vadd.f32 %v1073_v13, %v1443_v34  ;;  %v479_v15 = vpop.f32.mrb[23].mxu1  ;;  %1115 = vmatmul.mubr.bf16.vlgmr.msra.gmra.mrb[16].mxu0 %v637_v7  ;;  %v593_v17 = vmax.f32 %v485_v10, 0.0 }
 0x1df   :  { %v480_v16 = vadd.f32 %v1443_v34, %v479_v15  ;;  %v591_v19 = vmax.f32 %v477_v12, 0.0 }
 0x1e0   :  { %v594_v18 = vmax.f32 %v488_v14, 0.0 }
 0x1e1   :  { %v592_v20 = vmax.f32 %v480_v16, 0.0 }
 0x1e2   :  { %v639_v21 = vpack.c.bf16 %v594_v18, %v593_v17 }
 0x1e3   :  { %v638_v22 = vpack.c.bf16 %v592_v20, %v591_v19  ;;  %v1076_v23 = vpop.f32.mrb[24].mxu1 }
 0x1e4   :  { %v501_v24 = vadd.f32 %v1076_v23, %v1443_v34  ;;  %v492_v25 = vpop.f32.mrb[25].mxu1 }
 0x1e5   :  { %v493_v26 = vadd.f32 %v1443_v34, %v492_v25  ;;  %v1077_v27 = vpop.f32.mrb[26].mxu1  ;;  %1118 = vmatprep.mubr.bf16.mxu0 %v638_v22 }
 0x1e6   :  { %v504_v28 = vadd.f32 %v1077_v27, %v1443_v34  ;;  %v495_v29 = vpop.f32.mrb[27].mxu1  ;;  %1119 = vmatmul.mubr.bf16.gmra.mrb[20].mxu0 %v639_v21  ;;  %v597_v31 = vmax.f32 %v501_v24, 0.0 }
 0x1e7   :  { %v496_v30 = vadd.f32 %v1443_v34, %v495_v29  ;;  %v595_v33 = vmax.f32 %v493_v26, 0.0 }
 0x1e8   :  { %v598_v32 = vmax.f32 %v504_v28, 0.0 }
 0x1e9   :  { %v596_v35 = vmax.f32 %v496_v30, 0.0 }
 0x1ea   :  { %v641_v36 = vpack.c.bf16 %v598_v32, %v597_v31 }
 0x1eb   :  { %v640_v38 = vpack.c.bf16 %v596_v35, %v595_v33  ;;  %v1080_v39 = vpop.f32.mrb[28].mxu1 }
 0x1ec   :  { %v517_v40 = vadd.f32 %v1080_v39, %v1443_v34  ;;  %v508_v41 = vpop.f32.mrb[29].mxu1 }
 0x1ed   :  { %v509_v42 = vadd.f32 %v1443_v34, %v508_v41  ;;  %v1081_v43 = vpop.f32.mrb[30].mxu1  ;;  %1122 = vmatprep.mubr.bf16.mxu0 %v640_v38 }
 0x1ee   :  { %v520_v44 = vadd.f32 %v1081_v43, %v1443_v34  ;;  %v511_v45 = vpop.f32.mrb[31].mxu1  ;;  %1123 = vmatmul.mubr.bf16.gmra.mrb[24].mxu0 %v641_v36  ;;  %v601_v47 = vmax.f32 %v517_v40, 0.0 }
 0x1ef   :  { %v512_v46 = vadd.f32 %v1443_v34, %v511_v45  ;;  %v599_v49 = vmax.f32 %v509_v42, 0.0 }
 0x1f0   :  { %v602_v48 = vmax.f32 %v520_v44, 0.0 }
 0x1f1   :  { %v600_v50 = vmax.f32 %v512_v46, 0.0  ;;  %v1480_v46 = vld [vmem:[%s1616_s6] ss:$0 sm:$0xff] }
 0x1f2   :  { %v643_v51 = vpack.c.bf16 %v602_v48, %v601_v47 }
 0x1f3   :  { %v642_v52 = vpack.c.bf16 %v600_v50, %v599_v49  ;;  %v1084_v53 = vpop.f32.mrb[32].mxu1 }
 0x1f4   :  { %v533_v54 = vadd.f32 %v1084_v53, %v1443_v34  ;;  %v524_v55 = vpop.f32.mrb[33].mxu1 }
 0x1f5   :  { %v525_v56 = vadd.f32 %v1443_v34, %v524_v55  ;;  %v1085_v57 = vpop.f32.mrb[34].mxu1  ;;  %1126 = vmatprep.mubr.bf16.mxu0 %v642_v52 }
 0x1f6   :  { %v536_v6 = vadd.f32 %v1085_v57, %v1443_v34  ;;  %v527_v58 = vpop.f32.mrb[35].mxu1  ;;  %1127 = vmatmul.mubr.bf16.gmra.mrb[28].mxu0 %v643_v51  ;;  %v605_v59 = vmax.f32 %v533_v54, 0.0 }
 0x1f7   :  { %v528_v37 = vadd.f32 %v1443_v34, %v527_v58  ;;  %v603_v61 = vmax.f32 %v525_v56, 0.0 }
 0x1f8   :  { %v606_v60 = vmax.f32 %v536_v6, 0.0 }
 0x1f9   :  { %v604_v62 = vmax.f32 %v528_v37, 0.0 }
 0x1fa   :  { %v645_v63 = vpack.c.bf16 %v606_v60, %v605_v59 }
 0x1fb   :  { %v644_v0 = vpack.c.bf16 %v604_v62, %v603_v61  ;;  %v1088_v1 = vpop.f32.mrb[36].mxu1 }
 0x1fc   :  { %v549_v2 = vadd.f32 %v1088_v1, %v1443_v34  ;;  %v540_v3 = vpop.f32.mrb[37].mxu1 }
 0x1fd   :  { %v541_v4 = vadd.f32 %v1443_v34, %v540_v3  ;;  %v1089_v5 = vpop.f32.mrb[38].mxu1  ;;  %1130 = vmatprep.mubr.bf16.mxu0 %v644_v0 }
 0x1fe   :  { %v552_v7 = vadd.f32 %v1089_v5, %v1443_v34  ;;  %v543_v8 = vpop.f32.mrb[39].mxu1  ;;  %1131 = vmatmul.mubr.bf16.gmra.mrb[32].mxu0 %v645_v63  ;;  %v609_v10 = vmax.f32 %v549_v2, 0.0 }
 0x1ff   :  { %v544_v9 = vadd.f32 %v1443_v34, %v543_v8  ;;  %v607_v12 = vmax.f32 %v541_v4, 0.0 }
 0x200   :  { %v610_v11 = vmax.f32 %v552_v7, 0.0 }
 0x201   :  { %v608_v13 = vmax.f32 %v544_v9, 0.0 }
 0x202   :  { %v647_v14 = vpack.c.bf16 %v610_v11, %v609_v10 }
 0x203   :  { %v646_v15 = vpack.c.bf16 %v608_v13, %v607_v12  ;;  %v1092_v16 = vpop.f32.mrb[40].mxu1 }
 0x204   :  { %v565_v17 = vadd.f32 %v1092_v16, %v1443_v34  ;;  %v556_v18 = vpop.f32.mrb[41].mxu1 }
 0x205   :  { %v557_v19 = vadd.f32 %v1443_v34, %v556_v18  ;;  %v1093_v20 = vpop.f32.mrb[42].mxu1  ;;  %1134 = vmatprep.mubr.bf16.mxu0 %v646_v15 }
 0x206   :  { %v568_v21 = vadd.f32 %v1093_v20, %v1443_v34  ;;  %v559_v22 = vpop.f32.mrb[43].mxu1  ;;  %1135 = vmatmul.mubr.bf16.gmra.mrb[36].mxu0 %v647_v14  ;;  %v613_v24 = vmax.f32 %v565_v17, 0.0 }
 0x207   :  { %v560_v23 = vadd.f32 %v1443_v34, %v559_v22  ;;  %v611_v26 = vmax.f32 %v557_v19, 0.0 }
 0x208   :  { %v614_v25 = vmax.f32 %v568_v21, 0.0 }
 0x209   :  { %v612_v27 = vmax.f32 %v560_v23, 0.0 }
 0x20a   :  { %v649_v28 = vpack.c.bf16 %v614_v25, %v613_v24 }
 0x20b   :  { %v648_v29 = vpack.c.bf16 %v612_v27, %v611_v26  ;;  %v1096_v30 = vpop.f32.mrb[44].mxu1 }
 0x20c   :  { %v581_v31 = vadd.f32 %v1096_v30, %v1443_v34  ;;  %v572_v32 = vpop.f32.mrb[45].mxu1 }
 0x20d   :  { %v573_v33 = vadd.f32 %v1443_v34, %v572_v32  ;;  %v1097_v35 = vpop.f32.mrb[46].mxu1  ;;  %1138 = vmatprep.mubr.bf16.mxu0 %v648_v29 }
 0x20e   :  { %v584_v36 = vadd.f32 %v1097_v35, %v1443_v34  ;;  %v575_v38 = vpop.f32.mrb[47].mxu1  ;;  %1139 = vmatmul.mubr.bf16.gmra.mrb[40].mxu0 %v649_v28  ;;  %v617_v40 = vmax.f32 %v581_v31, 0.0 }
 0x20f   :  { %v576_v39 = vadd.f32 %v1443_v34, %v575_v38  ;;  %v615_v42 = vmax.f32 %v573_v33, 0.0 }
 0x210   :  { %v618_v41 = vmax.f32 %v584_v36, 0.0 }
 0x211   :  { %v616_v43 = vmax.f32 %v576_v39, 0.0 }
 0x212   :  { %v651_v44 = vpack.c.bf16 %v618_v41, %v617_v40 }
 0x213   :  { %v650_v45 = vpack.c.bf16 %v616_v43, %v615_v42 }
 0x215   :  { %1142 = vmatprep.mubr.bf16.mxu0 %v650_v45 }
 0x216   :  { %1143 = vmatmul.mubr.bf16.gmra.mrb[44].mxu0 %v651_v44 }
 0x2b1   :  { %v1116_v47 = vpop.f32.mrb[16].mxu0 }
 0x2b2   :  { %v749_v48 = vadd.f32 %v1116_v47, %v1480_v46  ;;  %v740_v49 = vpop.f32.mrb[17].mxu0 }
 0x2b3   :  { %v741_v50 = vadd.f32 %v1480_v46, %v740_v49  ;;  %v1117_v34 = vpop.f32.mrb[18].mxu0 }
 0x2b4   :  { %869 = vst [vmem:[%s1617_s7 + $0x10] sm:$0xff] %v749_v48  ;;  %v752_v51 = vadd.f32 %v1117_v34, %v1480_v46  ;;  %v743_v52 = vpop.f32.mrb[19].mxu0 }
 0x2b5   :  { %867 = vst [vmem:[%s1617_s7] sm:$0xff] %v741_v50  ;;  %v744_v53 = vadd.f32 %v1480_v46, %v743_v52 }
 0x2b6   :  { %870 = vst [vmem:[%s1617_s7 + $0x18] sm:$0xff] %v752_v51 }
 0x2b7   :  { %868 = vst [vmem:[%s1617_s7 + $0x8] sm:$0xff] %v744_v53 }
 0x2b9   :  { %v1120_v54 = vpop.f32.mrb[20].mxu0 }
 0x2ba   :  { %v765_v55 = vadd.f32 %v1120_v54, %v1480_v46  ;;  %v756_v56 = vpop.f32.mrb[21].mxu0 }
 0x2bb   :  { %v757_v57 = vadd.f32 %v1480_v46, %v756_v56  ;;  %v1121_v6 = vpop.f32.mrb[22].mxu0 }
 0x2bc   :  { %873 = vst [vmem:[%s1617_s7 + $0x30] sm:$0xff] %v765_v55  ;;  %v768_v58 = vadd.f32 %v1121_v6, %v1480_v46  ;;  %v759_v37 = vpop.f32.mrb[23].mxu0 }
 0x2bd   :  { %871 = vst [vmem:[%s1617_s7 + $0x20] sm:$0xff] %v757_v57  ;;  %v760_v59 = vadd.f32 %v1480_v46, %v759_v37 }
 0x2be   :  { %874 = vst [vmem:[%s1617_s7 + $0x38] sm:$0xff] %v768_v58 }
 0x2bf   :  { %872 = vst [vmem:[%s1617_s7 + $0x28] sm:$0xff] %v760_v59 }
 0x2c1   :  { %v1124_v60 = vpop.f32.mrb[24].mxu0 }
 0x2c2   :  { %v781_v61 = vadd.f32 %v1124_v60, %v1480_v46  ;;  %v772_v62 = vpop.f32.mrb[25].mxu0 }
 0x2c3   :  { %v773_v63 = vadd.f32 %v1480_v46, %v772_v62  ;;  %v1125_v0 = vpop.f32.mrb[26].mxu0 }
 0x2c4   :  { %877 = vst [vmem:[%s1617_s7 + $0x50] sm:$0xff] %v781_v61  ;;  %v784_v1 = vadd.f32 %v1125_v0, %v1480_v46  ;;  %v775_v2 = vpop.f32.mrb[27].mxu0 }
 0x2c5   :  { %875 = vst [vmem:[%s1617_s7 + $0x40] sm:$0xff] %v773_v63  ;;  %v776_v3 = vadd.f32 %v1480_v46, %v775_v2 }
 0x2c6   :  { %878 = vst [vmem:[%s1617_s7 + $0x58] sm:$0xff] %v784_v1 }
 0x2c7   :  { %876 = vst [vmem:[%s1617_s7 + $0x48] sm:$0xff] %v776_v3 }
 0x2c9   :  { %v1128_v4 = vpop.f32.mrb[28].mxu0 }
 0x2ca   :  { %v797_v5 = vadd.f32 %v1128_v4, %v1480_v46  ;;  %v788_v7 = vpop.f32.mrb[29].mxu0 }
 0x2cb   :  { %v789_v8 = vadd.f32 %v1480_v46, %v788_v7  ;;  %v1129_v9 = vpop.f32.mrb[30].mxu0 }
 0x2cc   :  { %881 = vst [vmem:[%s1617_s7 + $0x70] sm:$0xff] %v797_v5  ;;  %v800_v10 = vadd.f32 %v1129_v9, %v1480_v46  ;;  %v791_v11 = vpop.f32.mrb[31].mxu0 }
 0x2cd   :  { %879 = vst [vmem:[%s1617_s7 + $0x60] sm:$0xff] %v789_v8  ;;  %v792_v12 = vadd.f32 %v1480_v46, %v791_v11 }
 0x2ce   :  { %882 = vst [vmem:[%s1617_s7 + $0x78] sm:$0xff] %v800_v10 }
 0x2cf   :  { %880 = vst [vmem:[%s1617_s7 + $0x68] sm:$0xff] %v792_v12 }
 0x2d1   :  { %v1132_v13 = vpop.f32.mrb[32].mxu0 }
 0x2d2   :  { %v813_v14 = vadd.f32 %v1132_v13, %v1480_v46  ;;  %v804_v15 = vpop.f32.mrb[33].mxu0 }
 0x2d3   :  { %v805_v16 = vadd.f32 %v1480_v46, %v804_v15  ;;  %v1133_v17 = vpop.f32.mrb[34].mxu0 }
 0x2d4   :  { %885 = vst [vmem:[%s1617_s7 + $0x90] sm:$0xff] %v813_v14  ;;  %v816_v18 = vadd.f32 %v1133_v17, %v1480_v46  ;;  %v807_v19 = vpop.f32.mrb[35].mxu0 }
 0x2d5   :  { %883 = vst [vmem:[%s1617_s7 + $0x80] sm:$0xff] %v805_v16  ;;  %v808_v20 = vadd.f32 %v1480_v46, %v807_v19 }
 0x2d6   :  { %886 = vst [vmem:[%s1617_s7 + $0x98] sm:$0xff] %v816_v18 }
 0x2d7   :  { %884 = vst [vmem:[%s1617_s7 + $0x88] sm:$0xff] %v808_v20 }
 0x2d9   :  { %v1136_v21 = vpop.f32.mrb[36].mxu0 }
 0x2da   :  { %v829_v22 = vadd.f32 %v1136_v21, %v1480_v46  ;;  %v820_v23 = vpop.f32.mrb[37].mxu0 }
 0x2db   :  { %v821_v24 = vadd.f32 %v1480_v46, %v820_v23  ;;  %v1137_v25 = vpop.f32.mrb[38].mxu0 }
 0x2dc   :  { %889 = vst [vmem:[%s1617_s7 + $0xb0] sm:$0xff] %v829_v22  ;;  %v832_v26 = vadd.f32 %v1137_v25, %v1480_v46  ;;  %v823_v27 = vpop.f32.mrb[39].mxu0 }
 0x2dd   :  { %887 = vst [vmem:[%s1617_s7 + $0xa0] sm:$0xff] %v821_v24  ;;  %v824_v28 = vadd.f32 %v1480_v46, %v823_v27 }
 0x2de   :  { %890 = vst [vmem:[%s1617_s7 + $0xb8] sm:$0xff] %v832_v26 }
 0x2df   :  { %888 = vst [vmem:[%s1617_s7 + $0xa8] sm:$0xff] %v824_v28 }
 0x2e1   :  { %v1140_v29 = vpop.f32.mrb[40].mxu0 }
 0x2e2   :  { %v845_v30 = vadd.f32 %v1140_v29, %v1480_v46  ;;  %v836_v31 = vpop.f32.mrb[41].mxu0 }
 0x2e3   :  { %v837_v32 = vadd.f32 %v1480_v46, %v836_v31  ;;  %v1141_v33 = vpop.f32.mrb[42].mxu0 }
 0x2e4   :  { %893 = vst [vmem:[%s1617_s7 + $0xd0] sm:$0xff] %v845_v30  ;;  %v848_v35 = vadd.f32 %v1141_v33, %v1480_v46  ;;  %v839_v36 = vpop.f32.mrb[43].mxu0 }
 0x2e5   :  { %891 = vst [vmem:[%s1617_s7 + $0xc0] sm:$0xff] %v837_v32  ;;  %v840_v38 = vadd.f32 %v1480_v46, %v839_v36 }
 0x2e6   :  { %894 = vst [vmem:[%s1617_s7 + $0xd8] sm:$0xff] %v848_v35 }
 0x2e7   :  { %892 = vst [vmem:[%s1617_s7 + $0xc8] sm:$0xff] %v840_v38 }
 0x2e9   :  { %v1144_v39 = vpop.f32.mrb[44].mxu0 }
 0x2ea   :  { %v861_v40 = vadd.f32 %v1144_v39, %v1480_v46  ;;  %v852_v41 = vpop.f32.mrb[45].mxu0 }
 0x2eb   :  { %v853_v42 = vadd.f32 %v1480_v46, %v852_v41  ;;  %v1145_v43 = vpop.f32.mrb[46].mxu0 }
 0x2ec   :  { %897 = vst [vmem:[%s1617_s7 + $0xf0] sm:$0xff] %v861_v40  ;;  %v864_v44 = vadd.f32 %v1145_v43, %v1480_v46  ;;  %v855_v45 = vpop.f32.mrb[47].mxu0 }
 0x2ed   :  { %895 = vst [vmem:[%s1617_s7 + $0xe0] sm:$0xff] %v853_v42  ;;  %v856_v47 = vadd.f32 %v1480_v46, %v855_v45 }
 0x2ee   :  { %898 = vst [vmem:[%s1617_s7 + $0xf8] sm:$0xff] %v864_v44 }
 0x2ef   :  { %896 = vst [vmem:[%s1617_s7 + $0xe8] sm:$0xff] %v856_v47 }

</bundles_post_ra>
